<compile_context>
chip_gen: v7x
topology: tpu7x:2x2x1
jax: 0.10.0
libtpu: 0.0.40
codegen_flags: <defaults>
</compile_context>

<pallas_src>
import functools

import jax
import jax.numpy as jnp
from jax import lax
from jax.experimental import pallas as pl
from jax.experimental.pallas import tpu as pltpu

BN_EPS = 1e-5


def _row_toeplitz_weights(w_hwio, W):
    """Fold the horizontal (kx) taps and horizontal zero-padding of a 3x3 "same" conv
    into per-ky block-Toeplitz matrices.

    w_hwio : (KH, KW, Cin, Cout)
    returns: (KH, W*Cin, W*Cout) with
        rhs[ky, wp*Cin + ci, w*Cout + co] = w_hwio[ky, wp - w + KW//2, ci, co]
        (zero when the tap index falls outside [0, KW)).
    A lane-dense activation row (flattened (w, ci)) matmul'd with rhs[ky] yields the
    ky-row contribution to all W*Cout outputs of that row.
    """
    KH, KW, Cin, Cout = w_hwio.shape
    pad = KW // 2
    wp = jnp.arange(W)[:, None]            # source column index
    wo = jnp.arange(W)[None, :]            # output column index
    kx = wp - wo + pad                     # (W, W)
    valid = (kx >= 0) & (kx < KW)
    kx_c = jnp.clip(kx, 0, KW - 1)
    g = w_hwio[:, kx_c, :, :]              # (KH, wp, wo, Cin, Cout)
    g = jnp.where(valid[None, :, :, None, None], g, 0.0)
    g = jnp.transpose(g, (0, 1, 3, 2, 4))  # (KH, wp, Cin, wo, Cout)
    return g.reshape(KH, W * Cin, W * Cout)


def basic_block_kernel(x_ref, w1_ref, w2_ref, g1_ref, b1_ref, g2_ref, b2_ref,
                       out_ref, pad_ref, *, channels):
    """Fused BasicBlock forward.

    x_ref   : (N, H, W*C)   bf16  lane-dense NHWC rows (residual is read from here too)
    w*_ref  : (3, W*C, W*C) bf16  block-Toeplitz conv weights (one matrix per ky)
    g*/b*   : (1, W*C)      f32   BN gamma/beta, pre-tiled over W
    out_ref : (N, H, W*C)   f32
    pad_ref : (N, H+2, W*C) f32   scratch; vertical halo only, reused by both convs
    """
    N, H, WC = x_ref.shape
    C = channels
    R = N * H
    inv_m = 1.0 / float(N * H * (WC // C))     # 1 / (N*H*W) for BN batch statistics

    def conv_rows(w_ref):
        # One MXU matmul per kernel row ky; contraction depth K = W*Cin per matmul.
        acc = jnp.zeros((R, WC), jnp.float32)
        for ky in range(3):
            lhs = pad_ref[:, ky:ky + H, :].reshape(R, WC).astype(jnp.bfloat16)
            acc = acc + jnp.dot(lhs, w_ref[ky],
                                preferred_element_type=jnp.float32)
        return acc

    def batchnorm(act, gamma_wc, beta_wc):
        # Single-pass, training-mode BN (biased variance).  s1/s2 are per-(w, c) partial
        # sums; the XLU roll-tree pools them over the W groups so every lane ends up
        # holding its channel's global total, already broadcast across w (W = 2**k).
        s1 = jnp.sum(act, axis=0, keepdims=True)            # (1, W*C)
        s2 = jnp.sum(act * act, axis=0, keepdims=True)      # (1, W*C)
        shift = C
        while shift < WC:
            s1 = s1 + pltpu.roll(s1, shift, axis=1)
            s2 = s2 + pltpu.roll(s2, shift, axis=1)
            shift *= 2
        mean = s1 * inv_m
        var = s2 * inv_m - mean * mean
        scale = gamma_wc * lax.rsqrt(var + BN_EPS)
        return act * scale + (beta_wc - mean * scale)

    # ---- vertical halo only (horizontal padding lives in the Toeplitz weights) ----
    x32 = x_ref[...].astype(jnp.float32)                    # (N, H, W*C)
    pad_ref[:, 0:1, :] = jnp.zeros((N, 1, WC), jnp.float32)
    pad_ref[:, H + 1:H + 2, :] = jnp.zeros((N, 1, WC), jnp.float32)
    pad_ref[:, 1:H + 1, :] = x32

    # ---- conv1 -> bn1 -> relu ----
    h = jnp.maximum(batchnorm(conv_rows(w1_ref), g1_ref[...], b1_ref[...]), 0.0)

    # ---- reuse the same scratch for conv2 (halo rows are still zero) ----
    pad_ref[:, 1:H + 1, :] = h.reshape(N, H, WC)

    # ---- conv2 -> bn2 -> +residual -> relu ----
    h2 = batchnorm(conv_rows(w2_ref), g2_ref[...], b2_ref[...])
    h2 = h2 + x32.reshape(R, WC)
    out_ref[...] = jnp.maximum(h2, 0.0).reshape(N, H, WC)


@jax.jit
def basic_block_forward(x_nchw, w1_hwio, w2_hwio, g1, b1, g2, b2):
    """x_nchw: (N, C, H, W) f32; conv weights in HWIO (3,3,Cin,Cout). Returns NCHW f32."""
    N, C, H, W = x_nchw.shape
    Cout = w1_hwio.shape[-1]
    assert C == Cout, "downsample=None requires inplanes == planes"
    assert W > 0 and (W & (W - 1)) == 0, "kernel assumes W is a power of two"
    # TODO(synk): add a tiny 0/1-matmul channel-pooling fallback for non power-of-two W.

    WC = W * C
    # NCHW -> lane-dense NHWC rows (N, H, W*C); bf16 halves the input HBM traffic.
    x_rows = jnp.transpose(x_nchw, (0, 2, 3, 1)).reshape(N, H, WC)

    w1r = _row_toeplitz_weights(w1_hwio, W).astype(jnp.bfloat16)
    w2r = _row_toeplitz_weights(w2_hwio, W).astype(jnp.bfloat16)

    def tile_param(p):
        return jnp.tile(p.reshape(1, C).astype(jnp.float32), (1, W))

    out_rows = pl.pallas_call(
        functools.partial(basic_block_kernel, channels=C),
        out_shape=jax.ShapeDtypeStruct((N, H, WC), jnp.float32),
        in_specs=[pl.BlockSpec(memory_space=pltpu.MemorySpace.VMEM)] * 7,
        out_specs=pl.BlockSpec(memory_space=pltpu.MemorySpace.VMEM),
        scratch_shapes=[pltpu.VMEM((N, H + 2, WC), jnp.float32)],
        compiler_params=pltpu.CompilerParams(vmem_limit_bytes=32 * 1024 * 1024),
    )(x_rows.astype(jnp.bfloat16), w1r, w2r,
      tile_param(g1), tile_param(b1), tile_param(g2), tile_param(b2))

    return jnp.transpose(out_rows.reshape(N, H, W, C), (0, 3, 1, 2))


def reference_forward(x_nchw, w1_hwio, w2_hwio, g1, b1, g2, b2):
    """Plain-JAX reference mirroring the PyTorch module (training-mode BN)."""
    x = jnp.transpose(x_nchw, (0, 2, 3, 1))
    dn = ('NHWC', 'HWIO', 'NHWC')

    def bn(y, gamma, beta):
        mean = jnp.mean(y, axis=(0, 1, 2), keepdims=True)
        var = jnp.mean(jnp.square(y - mean), axis=(0, 1, 2), keepdims=True)
        return (y - mean) * lax.rsqrt(var + BN_EPS) * gamma + beta

    out = lax.conv_general_dilated(x, w1_hwio, (1, 1), ((1, 1), (1, 1)),
                                   dimension_numbers=dn)
    out = jnp.maximum(bn(out, g1, b1), 0.0)
    out = lax.conv_general_dilated(out, w2_hwio, (1, 1), ((1, 1), (1, 1)),
                                   dimension_numbers=dn)
    out = bn(out, g2, b2) + x
    out = jnp.maximum(out, 0.0)
    return jnp.transpose(out, (0, 3, 1, 2))


if __name__ == "__main__":
    # Small shapes consistent with the module: batch=2, inplanes=planes=8, 16x16.
    N, C, H, W = 2, 8, 16, 16

    key = jax.random.PRNGKey(0)
    kx, kw1, kw2, kg1, kb1, kg2, kb2 = jax.random.split(key, 7)

    x = jax.random.normal(kx, (N, C, H, W), jnp.float32)
    # Conv weights generated directly in HWIO layout (3, 3, Cin, Cout).
    w1 = 0.1 * jax.random.normal(kw1, (3, 3, C, C), jnp.float32)
    w2 = 0.1 * jax.random.normal(kw2, (3, 3, C, C), jnp.float32)
    g1 = 0.5 + jax.random.uniform(kg1, (C,), jnp.float32)
    b1 = 0.1 * jax.random.normal(kb1, (C,), jnp.float32)
    g2 = 0.5 + jax.random.uniform(kg2, (C,), jnp.float32)
    b2 = 0.1 * jax.random.normal(kb2, (C,), jnp.float32)

    out = basic_block_forward(x, w1, w2, g1, b1, g2, b2)
    out = jax.block_until_ready(out)

    ref = jax.block_until_ready(reference_forward(x, w1, w2, g1, b1, g2, b2))
    assert out.shape == (N, C, H, W)
    # bf16 MXU operands vs. an all-f32 reference: allow a modest absolute tolerance.
    err = float(jnp.max(jnp.abs(out - ref)))
    assert err < 5e-2, f"mismatch vs reference: max abs err = {err}"

    print("KERNEL_OK")
</pallas_src>

<mosaic_0001>
module attributes {stable_mosaic.version = 11 : i64} {
  func.func @basic_block_kernel(%arg0: memref<2x16x128xbf16, #tpu.memory_space<vmem>>, %arg1: memref<3x128x128xbf16, #tpu.memory_space<vmem>>, %arg2: memref<3x128x128xbf16, #tpu.memory_space<vmem>>, %arg3: memref<1x128xf32, #tpu.memory_space<vmem>>, %arg4: memref<1x128xf32, #tpu.memory_space<vmem>>, %arg5: memref<1x128xf32, #tpu.memory_space<vmem>>, %arg6: memref<1x128xf32, #tpu.memory_space<vmem>>, %arg7: memref<2x16x128xf32, #tpu.memory_space<vmem>>, %arg8: memref<2x18x128xf32, #tpu.memory_space<vmem>>) attributes {dimension_semantics = [], scalar_prefetch = 0 : i64, scratch_operands = 1 : i64, tpu.core_type = #tpu.core_type<tc>} {
    %c0 = arith.constant 0 : index
    %c0_0 = arith.constant 0 : index
    %c0_1 = arith.constant 0 : index
    %0 = vector.load %arg0[%c0, %c0_0, %c0_1] : memref<2x16x128xbf16, #tpu.memory_space<vmem>>, vector<2x16x128xbf16>
    %1 = arith.extf %0 : vector<2x16x128xbf16> to vector<2x16x128xf32>
    %cst = arith.constant 0.000000e+00 : f32
    %2 = vector.broadcast %cst : f32 to vector<2x1x128xf32>
    %c0_2 = arith.constant 0 : index
    %c0_3 = arith.constant 0 : index
    %c0_4 = arith.constant 0 : index
    %3 = vector.load %arg8[%c0_2, %c0_3, %c0_4] : memref<2x18x128xf32, #tpu.memory_space<vmem>>, vector<2x1x128xf32>
    tpu.vector_store %arg8[%c0_2, %c0_3, %c0_4], %2 {strides = array<i32>} : memref<2x18x128xf32, #tpu.memory_space<vmem>>, vector<2x1x128xf32>,
    %cst_5 = arith.constant 0.000000e+00 : f32
    %4 = vector.broadcast %cst_5 : f32 to vector<2x1x128xf32>
    %c0_6 = arith.constant 0 : index
    %c17 = arith.constant 17 : index
    %c0_7 = arith.constant 0 : index
    %5 = vector.load %arg8[%c0_6, %c17, %c0_7] : memref<2x18x128xf32, #tpu.memory_space<vmem>>, vector<2x1x128xf32>
    tpu.vector_store %arg8[%c0_6, %c17, %c0_7], %4 {strides = array<i32>} : memref<2x18x128xf32, #tpu.memory_space<vmem>>, vector<2x1x128xf32>,
    %c0_8 = arith.constant 0 : index
    %c1 = arith.constant 1 : index
    %c0_9 = arith.constant 0 : index
    %6 = vector.load %arg8[%c0_8, %c1, %c0_9] : memref<2x18x128xf32, #tpu.memory_space<vmem>>, vector<2x16x128xf32>
    tpu.vector_store %arg8[%c0_8, %c1, %c0_9], %1 {strides = array<i32>} : memref<2x18x128xf32, #tpu.memory_space<vmem>>, vector<2x16x128xf32>,
    %cst_10 = arith.constant 0.000000e+00 : f32
    %7 = vector.broadcast %cst_10 : f32 to vector<32x128xf32>
    %c0_11 = arith.constant 0 : index
    %c0_12 = arith.constant 0 : index
    %c0_13 = arith.constant 0 : index
    %8 = vector.load %arg8[%c0_11, %c0_12, %c0_13] : memref<2x18x128xf32, #tpu.memory_space<vmem>>, vector<2x16x128xf32>
    %9 = vector.shape_cast %8 : vector<2x16x128xf32> to vector<32x128xf32>
    %10 = arith.truncf %9 : vector<32x128xf32> to vector<32x128xbf16>
    %c0_14 = arith.constant 0 : index
    %c0_15 = arith.constant 0 : index
    %c0_16 = arith.constant 0 : index
    %11 = vector.load %arg1[%c0_14, %c0_15, %c0_16] : memref<3x128x128xbf16, #tpu.memory_space<vmem>>, vector<1x128x128xbf16>
    %12 = vector.shape_cast %11 : vector<1x128x128xbf16> to vector<128x128xbf16>
    %cst_17 = arith.constant dense<0.000000e+00> : vector<32x128xf32>
    %13 = tpu.matmul %10, %12, %cst_17 {dimension_numbers = #tpu.dot_dimension_numbers<[1], [0], [0], [1], [0, 0, 1, 1], [], []>} : vector<32x128xbf16>, vector<128x128xbf16>, vector<32x128xf32> -> vector<32x128xf32>
    %14 = arith.addf %7, %13 : vector<32x128xf32>
    %c0_18 = arith.constant 0 : index
    %c1_19 = arith.constant 1 : index
    %c0_20 = arith.constant 0 : index
    %15 = vector.load %arg8[%c0_18, %c1_19, %c0_20] : memref<2x18x128xf32, #tpu.memory_space<vmem>>, vector<2x16x128xf32>
    %16 = vector.shape_cast %15 : vector<2x16x128xf32> to vector<32x128xf32>
    %17 = arith.truncf %16 : vector<32x128xf32> to vector<32x128xbf16>
    %c1_21 = arith.constant 1 : index
    %c0_22 = arith.constant 0 : index
    %c0_23 = arith.constant 0 : index
    %18 = vector.load %arg1[%c1_21, %c0_22, %c0_23] : memref<3x128x128xbf16, #tpu.memory_space<vmem>>, vector<1x128x128xbf16>
    %19 = vector.shape_cast %18 : vector<1x128x128xbf16> to vector<128x128xbf16>
    %cst_24 = arith.constant dense<0.000000e+00> : vector<32x128xf32>
    %20 = tpu.matmul %17, %19, %cst_24 {dimension_numbers = #tpu.dot_dimension_numbers<[1], [0], [0], [1], [0, 0, 1, 1], [], []>} : vector<32x128xbf16>, vector<128x128xbf16>, vector<32x128xf32> -> vector<32x128xf32>
    %21 = arith.addf %14, %20 : vector<32x128xf32>
    %c0_25 = arith.constant 0 : index
    %c2 = arith.constant 2 : index
    %c0_26 = arith.constant 0 : index
    %22 = vector.load %arg8[%c0_25, %c2, %c0_26] : memref<2x18x128xf32, #tpu.memory_space<vmem>>, vector<2x16x128xf32>
    %23 = vector.shape_cast %22 : vector<2x16x128xf32> to vector<32x128xf32>
    %24 = arith.truncf %23 : vector<32x128xf32> to vector<32x128xbf16>
    %c2_27 = arith.constant 2 : index
    %c0_28 = arith.constant 0 : index
    %c0_29 = arith.constant 0 : index
    %25 = vector.load %arg1[%c2_27, %c0_28, %c0_29] : memref<3x128x128xbf16, #tpu.memory_space<vmem>>, vector<1x128x128xbf16>
    %26 = vector.shape_cast %25 : vector<1x128x128xbf16> to vector<128x128xbf16>
    %cst_30 = arith.constant dense<0.000000e+00> : vector<32x128xf32>
    %27 = tpu.matmul %24, %26, %cst_30 {dimension_numbers = #tpu.dot_dimension_numbers<[1], [0], [0], [1], [0, 0, 1, 1], [], []>} : vector<32x128xbf16>, vector<128x128xbf16>, vector<32x128xf32> -> vector<32x128xf32>
    %28 = arith.addf %21, %27 : vector<32x128xf32>
    %c0_31 = arith.constant 0 : index
    %c0_32 = arith.constant 0 : index
    %29 = vector.load %arg3[%c0_31, %c0_32] : memref<1x128xf32, #tpu.memory_space<vmem>>, vector<1x128xf32>
    %c0_33 = arith.constant 0 : index
    %c0_34 = arith.constant 0 : index
    %30 = vector.load %arg4[%c0_33, %c0_34] : memref<1x128xf32, #tpu.memory_space<vmem>>, vector<1x128xf32>
    %cst_35 = arith.constant dense<0.000000e+00> : vector<128xf32>
    %31 = vector.multi_reduction <add>, %28, %cst_35 [0] : vector<32x128xf32> to vector<128xf32>
    %32 = vector.shape_cast %31 : vector<128xf32> to vector<1x128xf32>
    %33 = arith.mulf %28, %28 : vector<32x128xf32>
    %cst_36 = arith.constant dense<0.000000e+00> : vector<128xf32>
    %34 = vector.multi_reduction <add>, %33, %cst_36 [0] : vector<32x128xf32> to vector<128xf32>
    %35 = vector.shape_cast %34 : vector<128xf32> to vector<1x128xf32>
    %c8_i32 = arith.constant 8 : i32
    %36 = tpu.dynamic_rotate %32 by %c8_i32 dim 1 : vector<1x128xf32>, i32 -> vector<1x128xf32>
    %37 = arith.addf %32, %36 : vector<1x128xf32>
    %c8_i32_37 = arith.constant 8 : i32
    %38 = tpu.dynamic_rotate %35 by %c8_i32_37 dim 1 : vector<1x128xf32>, i32 -> vector<1x128xf32>
    %39 = arith.addf %35, %38 : vector<1x128xf32>
    %c16_i32 = arith.constant 16 : i32
    %40 = tpu.dynamic_rotate %37 by %c16_i32 dim 1 : vector<1x128xf32>, i32 -> vector<1x128xf32>
    %41 = arith.addf %37, %40 : vector<1x128xf32>
    %c16_i32_38 = arith.constant 16 : i32
    %42 = tpu.dynamic_rotate %39 by %c16_i32_38 dim 1 : vector<1x128xf32>, i32 -> vector<1x128xf32>
    %43 = arith.addf %39, %42 : vector<1x128xf32>
    %c32_i32 = arith.constant 32 : i32
    %44 = tpu.dynamic_rotate %41 by %c32_i32 dim 1 : vector<1x128xf32>, i32 -> vector<1x128xf32>
    %45 = arith.addf %41, %44 : vector<1x128xf32>
    %c32_i32_39 = arith.constant 32 : i32
    %46 = tpu.dynamic_rotate %43 by %c32_i32_39 dim 1 : vector<1x128xf32>, i32 -> vector<1x128xf32>
    %47 = arith.addf %43, %46 : vector<1x128xf32>
    %c64_i32 = arith.constant 64 : i32
    %48 = tpu.dynamic_rotate %45 by %c64_i32 dim 1 : vector<1x128xf32>, i32 -> vector<1x128xf32>
    %49 = arith.addf %45, %48 : vector<1x128xf32>
    %c64_i32_40 = arith.constant 64 : i32
    %50 = tpu.dynamic_rotate %47 by %c64_i32_40 dim 1 : vector<1x128xf32>, i32 -> vector<1x128xf32>
    %51 = arith.addf %47, %50 : vector<1x128xf32>
    %cst_41 = arith.constant 0.001953125 : f32
    %52 = vector.broadcast %cst_41 : f32 to vector<1x128xf32>
    %53 = arith.mulf %49, %52 : vector<1x128xf32>
    %cst_42 = arith.constant 0.001953125 : f32
    %54 = vector.broadcast %cst_42 : f32 to vector<1x128xf32>
    %55 = arith.mulf %51, %54 : vector<1x128xf32>
    %56 = arith.mulf %53, %53 : vector<1x128xf32>
    %57 = arith.subf %55, %56 : vector<1x128xf32>
    %cst_43 = arith.constant 9.99999974E-6 : f32
    %58 = vector.broadcast %cst_43 : f32 to vector<1x128xf32>
    %59 = arith.addf %57, %58 : vector<1x128xf32>
    %60 = math.rsqrt %59 : vector<1x128xf32>
    %61 = arith.mulf %29, %60 : vector<1x128xf32>
    %62 = vector.broadcast %61 : vector<1x128xf32> to vector<32x128xf32>
    %63 = arith.mulf %28, %62 : vector<32x128xf32>
    %64 = arith.mulf %53, %61 : vector<1x128xf32>
    %65 = arith.subf %30, %64 : vector<1x128xf32>
    %66 = vector.broadcast %65 : vector<1x128xf32> to vector<32x128xf32>
    %67 = arith.addf %63, %66 : vector<32x128xf32>
    %cst_44 = arith.constant 0.000000e+00 : f32
    %68 = vector.broadcast %cst_44 : f32 to vector<32x128xf32>
    %69 = arith.maximumf %67, %68 : vector<32x128xf32>
    %70 = vector.shape_cast %69 : vector<32x128xf32> to vector<2x16x128xf32>
    %c0_45 = arith.constant 0 : index
    %c1_46 = arith.constant 1 : index
    %c0_47 = arith.constant 0 : index
    %71 = vector.load %arg8[%c0_45, %c1_46, %c0_47] : memref<2x18x128xf32, #tpu.memory_space<vmem>>, vector<2x16x128xf32>
    tpu.vector_store %arg8[%c0_45, %c1_46, %c0_47], %70 {strides = array<i32>} : memref<2x18x128xf32, #tpu.memory_space<vmem>>, vector<2x16x128xf32>,
    %cst_48 = arith.constant 0.000000e+00 : f32
    %72 = vector.broadcast %cst_48 : f32 to vector<32x128xf32>
    %c0_49 = arith.constant 0 : index
    %c0_50 = arith.constant 0 : index
    %c0_51 = arith.constant 0 : index
    %73 = vector.load %arg8[%c0_49, %c0_50, %c0_51] : memref<2x18x128xf32, #tpu.memory_space<vmem>>, vector<2x16x128xf32>
    %74 = vector.shape_cast %73 : vector<2x16x128xf32> to vector<32x128xf32>
    %75 = arith.truncf %74 : vector<32x128xf32> to vector<32x128xbf16>
    %c0_52 = arith.constant 0 : index
    %c0_53 = arith.constant 0 : index
    %c0_54 = arith.constant 0 : index
    %76 = vector.load %arg2[%c0_52, %c0_53, %c0_54] : memref<3x128x128xbf16, #tpu.memory_space<vmem>>, vector<1x128x128xbf16>
    %77 = vector.shape_cast %76 : vector<1x128x128xbf16> to vector<128x128xbf16>
    %cst_55 = arith.constant dense<0.000000e+00> : vector<32x128xf32>
    %78 = tpu.matmul %75, %77, %cst_55 {dimension_numbers = #tpu.dot_dimension_numbers<[1], [0], [0], [1], [0, 0, 1, 1], [], []>} : vector<32x128xbf16>, vector<128x128xbf16>, vector<32x128xf32> -> vector<32x128xf32>
    %79 = arith.addf %72, %78 : vector<32x128xf32>
    %c0_56 = arith.constant 0 : index
    %c1_57 = arith.constant 1 : index
    %c0_58 = arith.constant 0 : index
    %80 = vector.load %arg8[%c0_56, %c1_57, %c0_58] : memref<2x18x128xf32, #tpu.memory_space<vmem>>, vector<2x16x128xf32>
    %81 = vector.shape_cast %80 : vector<2x16x128xf32> to vector<32x128xf32>
    %82 = arith.truncf %81 : vector<32x128xf32> to vector<32x128xbf16>
    %c1_59 = arith.constant 1 : index
    %c0_60 = arith.constant 0 : index
    %c0_61 = arith.constant 0 : index
    %83 = vector.load %arg2[%c1_59, %c0_60, %c0_61] : memref<3x128x128xbf16, #tpu.memory_space<vmem>>, vector<1x128x128xbf16>
    %84 = vector.shape_cast %83 : vector<1x128x128xbf16> to vector<128x128xbf16>
    %cst_62 = arith.constant dense<0.000000e+00> : vector<32x128xf32>
    %85 = tpu.matmul %82, %84, %cst_62 {dimension_numbers = #tpu.dot_dimension_numbers<[1], [0], [0], [1], [0, 0, 1, 1], [], []>} : vector<32x128xbf16>, vector<128x128xbf16>, vector<32x128xf32> -> vector<32x128xf32>
    %86 = arith.addf %79, %85 : vector<32x128xf32>
    %c0_63 = arith.constant 0 : index
    %c2_64 = arith.constant 2 : index
    %c0_65 = arith.constant 0 : index
    %87 = vector.load %arg8[%c0_63, %c2_64, %c0_65] : memref<2x18x128xf32, #tpu.memory_space<vmem>>, vector<2x16x128xf32>
    %88 = vector.shape_cast %87 : vector<2x16x128xf32> to vector<32x128xf32>
    %89 = arith.truncf %88 : vector<32x128xf32> to vector<32x128xbf16>
    %c2_66 = arith.constant 2 : index
    %c0_67 = arith.constant 0 : index
    %c0_68 = arith.constant 0 : index
    %90 = vector.load %arg2[%c2_66, %c0_67, %c0_68] : memref<3x128x128xbf16, #tpu.memory_space<vmem>>, vector<1x128x128xbf16>
    %91 = vector.shape_cast %90 : vector<1x128x128xbf16> to vector<128x128xbf16>
    %cst_69 = arith.constant dense<0.000000e+00> : vector<32x128xf32>
    %92 = tpu.matmul %89, %91, %cst_69 {dimension_numbers = #tpu.dot_dimension_numbers<[1], [0], [0], [1], [0, 0, 1, 1], [], []>} : vector<32x128xbf16>, vector<128x128xbf16>, vector<32x128xf32> -> vector<32x128xf32>
    %93 = arith.addf %86, %92 : vector<32x128xf32>
    %c0_70 = arith.constant 0 : index
    %c0_71 = arith.constant 0 : index
    %94 = vector.load %arg5[%c0_70, %c0_71] : memref<1x128xf32, #tpu.memory_space<vmem>>, vector<1x128xf32>
    %c0_72 = arith.constant 0 : index
    %c0_73 = arith.constant 0 : index
    %95 = vector.load %arg6[%c0_72, %c0_73] : memref<1x128xf32, #tpu.memory_space<vmem>>, vector<1x128xf32>
    %cst_74 = arith.constant dense<0.000000e+00> : vector<128xf32>
    %96 = vector.multi_reduction <add>, %93, %cst_74 [0] : vector<32x128xf32> to vector<128xf32>
    %97 = vector.shape_cast %96 : vector<128xf32> to vector<1x128xf32>
    %98 = arith.mulf %93, %93 : vector<32x128xf32>
    %cst_75 = arith.constant dense<0.000000e+00> : vector<128xf32>
    %99 = vector.multi_reduction <add>, %98, %cst_75 [0] : vector<32x128xf32> to vector<128xf32>
    %100 = vector.shape_cast %99 : vector<128xf32> to vector<1x128xf32>
    %c8_i32_76 = arith.constant 8 : i32
    %101 = tpu.dynamic_rotate %97 by %c8_i32_76 dim 1 : vector<1x128xf32>, i32 -> vector<1x128xf32>
    %102 = arith.addf %97, %101 : vector<1x128xf32>
    %c8_i32_77 = arith.constant 8 : i32
    %103 = tpu.dynamic_rotate %100 by %c8_i32_77 dim 1 : vector<1x128xf32>, i32 -> vector<1x128xf32>
    %104 = arith.addf %100, %103 : vector<1x128xf32>
    %c16_i32_78 = arith.constant 16 : i32
    %105 = tpu.dynamic_rotate %102 by %c16_i32_78 dim 1 : vector<1x128xf32>, i32 -> vector<1x128xf32>
    %106 = arith.addf %102, %105 : vector<1x128xf32>
    %c16_i32_79 = arith.constant 16 : i32
    %107 = tpu.dynamic_rotate %104 by %c16_i32_79 dim 1 : vector<1x128xf32>, i32 -> vector<1x128xf32>
    %108 = arith.addf %104, %107 : vector<1x128xf32>
    %c32_i32_80 = arith.constant 32 : i32
    %109 = tpu.dynamic_rotate %106 by %c32_i32_80 dim 1 : vector<1x128xf32>, i32 -> vector<1x128xf32>
    %110 = arith.addf %106, %109 : vector<1x128xf32>
    %c32_i32_81 = arith.constant 32 : i32
    %111 = tpu.dynamic_rotate %108 by %c32_i32_81 dim 1 : vector<1x128xf32>, i32 -> vector<1x128xf32>
    %112 = arith.addf %108, %111 : vector<1x128xf32>
    %c64_i32_82 = arith.constant 64 : i32
    %113 = tpu.dynamic_rotate %110 by %c64_i32_82 dim 1 : vector<1x128xf32>, i32 -> vector<1x128xf32>
    %114 = arith.addf %110, %113 : vector<1x128xf32>
    %c64_i32_83 = arith.constant 64 : i32
    %115 = tpu.dynamic_rotate %112 by %c64_i32_83 dim 1 : vector<1x128xf32>, i32 -> vector<1x128xf32>
    %116 = arith.addf %112, %115 : vector<1x128xf32>
    %cst_84 = arith.constant 0.001953125 : f32
    %117 = vector.broadcast %cst_84 : f32 to vector<1x128xf32>
    %118 = arith.mulf %114, %117 : vector<1x128xf32>
    %cst_85 = arith.constant 0.001953125 : f32
    %119 = vector.broadcast %cst_85 : f32 to vector<1x128xf32>
    %120 = arith.mulf %116, %119 : vector<1x128xf32>
    %121 = arith.mulf %118, %118 : vector<1x128xf32>
    %122 = arith.subf %120, %121 : vector<1x128xf32>
    %cst_86 = arith.constant 9.99999974E-6 : f32
    %123 = vector.broadcast %cst_86 : f32 to vector<1x128xf32>
    %124 = arith.addf %122, %123 : vector<1x128xf32>
    %125 = math.rsqrt %124 : vector<1x128xf32>
    %126 = arith.mulf %94, %125 : vector<1x128xf32>
    %127 = vector.broadcast %126 : vector<1x128xf32> to vector<32x128xf32>
    %128 = arith.mulf %93, %127 : vector<32x128xf32>
    %129 = arith.mulf %118, %126 : vector<1x128xf32>
    %130 = arith.subf %95, %129 : vector<1x128xf32>
    %131 = vector.broadcast %130 : vector<1x128xf32> to vector<32x128xf32>
    %132 = arith.addf %128, %131 : vector<32x128xf32>
    %133 = vector.shape_cast %1 : vector<2x16x128xf32> to vector<32x128xf32>
    %134 = arith.addf %132, %133 : vector<32x128xf32>
    %cst_87 = arith.constant 0.000000e+00 : f32
    %135 = vector.broadcast %cst_87 : f32 to vector<32x128xf32>
    %136 = arith.maximumf %134, %135 : vector<32x128xf32>
    %137 = vector.shape_cast %136 : vector<32x128xf32> to vector<2x16x128xf32>
    %c0_88 = arith.constant 0 : index
    %c0_89 = arith.constant 0 : index
    %c0_90 = arith.constant 0 : index
    %138 = vector.load %arg7[%c0_88, %c0_89, %c0_90] : memref<2x16x128xf32, #tpu.memory_space<vmem>>, vector<2x16x128xf32>
    tpu.vector_store %arg7[%c0_88, %c0_89, %c0_90], %137 {strides = array<i32>} : memref<2x16x128xf32, #tpu.memory_space<vmem>>, vector<2x16x128xf32>,
    return
  }
}

</mosaic_0001>

<bundles_post_ra>
// kernel: basic_block_forward.1
= control target key start
LH: loop header
LB: loop body
LE: loop exit
PB: predicated region body
PF: predicated region fallthrough
CT: control target
= control target key end

     0   :  { %v1323_v1 = vmov 0.0   ;;  %s1326_s10 = smov 32   ;;  %s1327_s17 = smov 64   ;;  %s1642_s1 = inlined_call_operand.vmem [shape: bf16[3,128,128], index: 1, kind: input, shape index: {}]   ;;  %s1643_s0 = inlined_call_operand.vmem [shape: bf16[2,16,128], index: 0, kind: input, shape index: {}]   ;;  %s1644_s2 = inlined_call_operand.vmem [shape: bf16[3,128,128], index: 2, kind: input, shape index: {}]   ;;  %s1645_s3 = inlined_call_operand.vmem [shape: f32[1,128], index: 3, kind: input, shape index: {}]   ;;  %s1646_s4 = inlined_call_operand.vmem [shape: f32[1,128], index: 4, kind: input, shape index: {}]   ;;  %s1647_s5 = inlined_call_operand.vmem [shape: f32[1,128], index: 5, kind: input, shape index: {}]   ;;  %s1648_s6 = inlined_call_operand.vmem [shape: f32[1,128], index: 6, kind: input, shape index: {}]   ;;  %s1649_s7 = inlined_call_operand.vmem [shape: f32[2,16,128], index: 7, kind: output, shape index: {}]  }
   0x1   :  { %v1269_v0 = vld [vmem:[%s1642_s1 + $0x40] sm:$0xff]   ;;  %35 = vst [vmem:[#allocation2] sm:$0x1] %v1323_v1  ;;  %36 = vst [vmem:[#allocation2 + $0x18] sm:$0x1] %v1323_v1  ;;  %v1270_v2 = vld [vmem:[%s1642_s1 + $0x48] sm:$0xff]  }
   0x2   :  { %37 = vst [vmem:[#allocation2 + $0x11] sm:$0x1] %v1323_v1  ;;  %38 = vst [vmem:[#allocation2 + $0x29] sm:$0x1] %v1323_v1  ;;  %1128 = vmatprep.subr.bf16.mxu0 %v1269_v0  ;;  %v1271_v3 = vld [vmem:[%s1642_s1 + $0x50] sm:$0xff]   ;;  %v1272_v4 = vld [vmem:[%s1642_s1 + $0x58] sm:$0xff]  }
   0x3   :  { %1129 = vmatpush3.bf16.msra.mxu0 %v1269_v0  ;;  %v1383_v5 = vld [vmem:[%s1643_s0] sm:$0xff]   ;;  %v1388_v6 = vld [vmem:[%s1643_s0 + $0x8] sm:$0xff]   ;;  %v1275_v14 = vld [vmem:[%s1642_s1 + $0x70] sm:$0xff]  }
   0x4   :  { %1130 = vmatprep.subr.bf16.mxu0 %v1270_v2  ;;  %v1277_v7 = vld [vmem:[%s1643_s0] sm:$0xff]  ;;  %v1061_v8 = vunpack.c.l.bf16 %v1383_v5  ;;  %v1062_v9 = vunpack.c.h.bf16 %v1383_v5  ;;  %v1065_v10 = vunpack.c.l.bf16 %v1388_v6  ;;  %v1066_v11 = vunpack.c.h.bf16 %v1388_v6  ;;  %v1274_v13 = vld [vmem:[%s1642_s1 + $0x68] sm:$0xff]   ;;  %v1276_v15 = vld [vmem:[%s1642_s1 + $0x78] sm:$0xff]  }
   0x5   :  { %1144 = vmatprep.mubr.bf16.mxu0 %v1277_v7  ;;  %v1273_v12 = vld [vmem:[%s1642_s1 + $0x60] sm:$0xff]   ;;  %v1279_v19 = vld [vmem:[%s1643_s0 + $0x8] sm:$0xff]  ;;  %v1281_v22 = vld [vmem:[%s1642_s1 + $0x10] sm:$0xff]   ;;  %s1325_s0 = smov 16  }
   0x6   :  { %39 = vst [vmem:[#allocation2 + $0x1] sm:$0xff] %v1061_v8  ;;  %40 = vst [vmem:[#allocation2 + $0x9] sm:$0xff] %v1062_v9  ;;  %v1278_v16 = vld [vmem:[%s1642_s1] sm:$0xff]   ;;  %v1280_v21 = vld [vmem:[%s1642_s1 + $0x8] sm:$0xff]  }
   0x7   :  { %1131 = vmatpush3.bf16.msra.mxu0 %v1270_v2  ;;  %41 = vst [vmem:[#allocation2 + $0x19] sm:$0xff] %v1065_v10  ;;  %42 = vst [vmem:[#allocation2 + $0x21] sm:$0xff] %v1066_v11  ;;  %v1282_v23 = vld [vmem:[%s1642_s1 + $0x18] sm:$0xff]   ;;  %v1283_v24 = vld [vmem:[%s1642_s1 + $0x20] sm:$0xff]  }
   0x8   :  { %1132 = vmatprep.subr.bf16.mxu0 %v1271_v3  ;;  %v1284_v25 = vld [vmem:[%s1642_s1 + $0x28] sm:$0xff]   ;;  %v1285_v26 = vld [vmem:[%s1642_s1 + $0x30] sm:$0xff]   ;;  %v1286_v27 = vld [vmem:[%s1642_s1 + $0x38] sm:$0xff]  }
   0x9   :  { %v1287_v30 = vld [vmem:[%s1642_s1 + $0x80] sm:$0xff]   ;;  %v1288_v35 = vld [vmem:[%s1642_s1 + $0x88] sm:$0xff]   ;;  %v1289_v36 = vld [vmem:[%s1642_s1 + $0x90] sm:$0xff]  }
   0xa   :  { %v1290_v37 = vld [vmem:[%s1642_s1 + $0x98] sm:$0xff]   ;;  %v1291_v38 = vld [vmem:[%s1642_s1 + $0xa0] sm:$0xff]   ;;  %v1292_v39 = vld [vmem:[%s1642_s1 + $0xa8] sm:$0xff]  }
   0xb   :  { %1133 = vmatpush3.bf16.msra.mxu0 %v1271_v3  ;;  %v1293_v40 = vld [vmem:[%s1642_s1 + $0xb0] sm:$0xff]   ;;  %v1294_v41 = vld [vmem:[%s1642_s1 + $0xb8] sm:$0xff]   ;;  %s1324_s1 = smov 8  }
   0xc   :  { %1134 = vmatprep.subr.bf16.mxu0 %v1272_v4 }
   0xd   :  { %v43_v17 = vld [vmem:[#allocation2] sm:$0xff]  ;;  %v44_v18 = vld [vmem:[#allocation2 + $0x8] sm:$0xff] }
   0xe   :  { %v47_v20 = vpack.c.bf16 %v44_v18, %v43_v17  ;;  %v45_v28 = vld [vmem:[#allocation2 + $0x18] sm:$0xff]  ;;  %v46_v29 = vld [vmem:[#allocation2 + $0x20] sm:$0xff]  ;;  %v283_v32 = vld [vmem:[#allocation2 + $0xa] sm:$0xff] }
   0xf   :  { %1135 = vmatpush3.bf16.msra.mxu0 %v1272_v4  ;;  %v282_v31 = vld [vmem:[#allocation2 + $0x2] sm:$0xff]  ;;  %v48_v33 = vpack.c.bf16 %v46_v29, %v45_v28  ;;  %v284_v42 = vld [vmem:[#allocation2 + $0x1a] sm:$0xff] }
  0x10   :  { %1136 = vmatprep.subr.bf16.mxu0 %v1273_v12  ;;  %v286_v34 = vpack.c.bf16 %v283_v32, %v282_v31  ;;  %v285_v43 = vld [vmem:[#allocation2 + $0x22] sm:$0xff]  ;;  %v1298_v28 = vld [vmem:[%s1644_s2 + $0x58] sm:$0xff]   ;;  %v1301_v31 = vld [vmem:[%s1644_s2 + $0x70] sm:$0xff]  }
  0x11   :  { %v287_v44 = vpack.c.bf16 %v285_v43, %v284_v42  ;;  %v1299_v29 = vld [vmem:[%s1644_s2 + $0x60] sm:$0xff]   ;;  %v1302_v32 = vld [vmem:[%s1644_s2 + $0x78] sm:$0xff]   ;;  %v462_v43 = vlaneseq }
  0x13   :  { %1137 = vmatpush3.bf16.msra.mxu0 %v1273_v12 }
  0x14   :  { %1138 = vmatprep.subr.bf16.mxu0 %v1274_v13 }
  0x17   :  { %1139 = vmatpush3.bf16.msra.mxu0 %v1274_v13 }
  0x18   :  { %1140 = vmatprep.subr.bf16.mxu0 %v1275_v14 }
  0x1b   :  { %1141 = vmatpush3.bf16.msra.mxu0 %v1275_v14 }
  0x1c   :  { %1142 = vmatprep.subr.bf16.mxu0 %v1276_v15 }
  0x1f   :  { %1143 = vmatpush3.bf16.msra.mxu0 %v1276_v15 }
  0x20   :  { %1148 = vmatprep.subr.bf16.mxu0 %v1278_v16 }
  0x22   :  { %1145 = vmatmul.mubr.bf16.vlgmr.msra.gmra.mrb[0].mxu0 %v1279_v19 }
  0x23   :  { %1149 = vmatpush3.bf16.msra.mxu0 %v1278_v16  ;;  %1164 = vmatprep.mubr.bf16.mxu0 %v47_v20 }
  0x24   :  { %1150 = vmatprep.subr.bf16.mxu0 %v1280_v21 }
  0x27   :  { %1151 = vmatpush3.bf16.msra.mxu0 %v1280_v21  ;;  %v1295_v21 = vld [vmem:[%s1644_s2 + $0x40] sm:$0xff]  }
  0x28   :  { %1152 = vmatprep.subr.bf16.mxu0 %v1281_v22  ;;  %1188 = vmatprep.subr.bf16.mxu1 %v1295_v21 }
  0x29   :  { %1189 = vmatpush3.bf16.msra.mxu1 %v1295_v21 }
  0x2b   :  { %1153 = vmatpush3.bf16.msra.mxu0 %v1281_v22  ;;  %v1296_v22 = vld [vmem:[%s1644_s2 + $0x48] sm:$0xff]  }
  0x2c   :  { %1154 = vmatprep.subr.bf16.mxu0 %v1282_v23  ;;  %1190 = vmatprep.subr.bf16.mxu1 %v1296_v22 }
  0x2d   :  { %1191 = vmatpush3.bf16.msra.mxu1 %v1296_v22 }
  0x2f   :  { %1155 = vmatpush3.bf16.msra.mxu0 %v1282_v23 }
  0x30   :  { %1156 = vmatprep.subr.bf16.mxu0 %v1283_v24 }
  0x33   :  { %1157 = vmatpush3.bf16.msra.mxu0 %v1283_v24 }
  0x34   :  { %1158 = vmatprep.subr.bf16.mxu0 %v1284_v25 }
  0x37   :  { %1159 = vmatpush3.bf16.msra.mxu0 %v1284_v25  ;;  %v1297_v25 = vld [vmem:[%s1644_s2 + $0x50] sm:$0xff]  }
  0x38   :  { %1160 = vmatprep.subr.bf16.mxu0 %v1285_v26  ;;  %1192 = vmatprep.subr.bf16.mxu1 %v1297_v25 }
  0x39   :  { %1193 = vmatpush3.bf16.msra.mxu1 %v1297_v25 }
  0x3a   :  { %1194 = vmatprep.subr.bf16.mxu1 %v1298_v28 }
  0x3b   :  { %1161 = vmatpush3.bf16.msra.mxu0 %v1285_v26 }
  0x3c   :  { %1162 = vmatprep.subr.bf16.mxu0 %v1286_v27 }
  0x3d   :  { %1195 = vmatpush3.bf16.msra.mxu1 %v1298_v28  ;;  %v1313_v28 = vld [vmem:[%s1644_s2 + $0x90] sm:$0xff]  }
  0x3e   :  { %1196 = vmatprep.subr.bf16.mxu1 %v1299_v29 }
  0x3f   :  { %1163 = vmatpush3.bf16.msra.mxu0 %v1286_v27 }
  0x40   :  { %1168 = vmatprep.subr.bf16.mxu0 %v1287_v30 }
  0x41   :  { %1197 = vmatpush3.bf16.msra.mxu1 %v1299_v29  ;;  %v1314_v29 = vld [vmem:[%s1644_s2 + $0x98] sm:$0xff]  }
  0x42   :  { %1165 = vmatmul.mubr.bf16.vlgmr.msra.gmra.mrb[0].mxu0 %v48_v33  ;;  %v1303_v33 = vld [vmem:[%s1644_s2] sm:$0xff]  }
  0x43   :  { %1169 = vmatpush3.bf16.msra.mxu0 %v1287_v30  ;;  %1184 = vmatprep.mubr.bf16.mxu0 %v286_v34  ;;  %v1300_v30 = vld [vmem:[%s1644_s2 + $0x68] sm:$0xff]  }
  0x44   :  { %1170 = vmatprep.subr.bf16.mxu0 %v1288_v35  ;;  %1198 = vmatprep.subr.bf16.mxu1 %v1300_v30 }
  0x45   :  { %1199 = vmatpush3.bf16.msra.mxu1 %v1300_v30  ;;  %v1315_v30 = vld [vmem:[%s1644_s2 + $0xa0] sm:$0xff]  }
  0x46   :  { %1200 = vmatprep.subr.bf16.mxu1 %v1301_v31 }
  0x47   :  { %1171 = vmatpush3.bf16.msra.mxu0 %v1288_v35 }
  0x48   :  { %1172 = vmatprep.subr.bf16.mxu0 %v1289_v36 }
  0x49   :  { %1201 = vmatpush3.bf16.msra.mxu1 %v1301_v31  ;;  %v1316_v31 = vld [vmem:[%s1644_s2 + $0xa8] sm:$0xff]  }
  0x4a   :  { %1202 = vmatprep.subr.bf16.mxu1 %v1302_v32 }
  0x4b   :  { %1173 = vmatpush3.bf16.msra.mxu0 %v1289_v36 }
  0x4c   :  { %1174 = vmatprep.subr.bf16.mxu0 %v1290_v37 }
  0x4d   :  { %1203 = vmatpush3.bf16.msra.mxu1 %v1302_v32  ;;  %v1317_v32 = vld [vmem:[%s1644_s2 + $0xb0] sm:$0xff]  }
  0x4e   :  { %1208 = vmatprep.subr.bf16.mxu1 %v1303_v33 }
  0x4f   :  { %1175 = vmatpush3.bf16.msra.mxu0 %v1290_v37 }
  0x50   :  { %1176 = vmatprep.subr.bf16.mxu0 %v1291_v38 }
  0x53   :  { %1177 = vmatpush3.bf16.msra.mxu0 %v1291_v38 }
  0x54   :  { %1178 = vmatprep.subr.bf16.mxu0 %v1292_v39 }
  0x57   :  { %1179 = vmatpush3.bf16.msra.mxu0 %v1292_v39 }
  0x58   :  { %1180 = vmatprep.subr.bf16.mxu0 %v1293_v40 }
  0x5b   :  { %1181 = vmatpush3.bf16.msra.mxu0 %v1293_v40 }
  0x5c   :  { %1182 = vmatprep.subr.bf16.mxu0 %v1294_v41 }
  0x5f   :  { %1183 = vmatpush3.bf16.msra.mxu0 %v1294_v41 }
  0x62   :  { %1185 = vmatmul.mubr.bf16.vlgmr.msra.gmra.mrb[0].mxu0 %v287_v44  ;;  %v463_v44 = vshrl.u32 %v462_v43, 7 }
 0x135   :  { %v1468_v45 = vpop.f32.mrb[0].mxu0 }
 0x136   :  { %v1470_v46 = vpop.f32.mrb[1].mxu0  ;;  %v419_v52 = vmul.f32 %v1468_v45, %v1468_v45 }
 0x137   :  { %v1472_v47 = vpop.f32.mrb[2].mxu0  ;;  %v417_v49 = vmul.f32 %v1470_v46, %v1470_v46 }
 0x138   :  { %v1474_v48 = vpop.f32.mrb[3].mxu0  ;;  %v420_v55 = vmul.f32 %v1472_v47, %v1472_v47 }
 0x139   :  { %v408_v50 = vadd.f32 %v1474_v48, %v1470_v46  ;;  %v418_v51 = vmul.f32 %v1474_v48, %v1474_v48 }
 0x13b   :  { %v409_v53 = vadd.f32 %v1468_v45, %v408_v50  ;;  %v421_v54 = vadd.f32 %v418_v51, %v417_v49  ;;  %v406_v49 = vld [vmem:[%s1645_s3] sm:$0x1]  ;;  %v1526_v50 = vsub.s32 0, %v463_v44 }
 0x13d   :  { %v410_v56 = vadd.f32 %v1472_v47, %v409_v53  ;;  %v422_v57 = vadd.f32 %v421_v54, %v419_v52  ;;  %v407_v53 = vld [vmem:[%s1646_s4] sm:$0x1] }
 0x13f   :  { %v423_v58 = vadd.f32 %v422_v57, %v420_v55  ;;  %v411_v59 = vrot.slane %v410_v56, 4 }
 0x141   :  { %v424_v60 = vrot.slane %v423_v58, 4  ;;  %v412_v61 = vadd.f32 %v411_v59, %v410_v56 }
 0x143   :  { %v413_v62 = vrot.slane %v412_v61, 2  ;;  %v425_v63 = vadd.f32 %v424_v60, %v423_v58 }
 0x145   :  { %v414_v0 = vadd.f32 %v413_v62, %v412_v61  ;;  %v426_v1 = vrot.slane %v425_v63, 2 }
 0x147   :  { %v415_v2 = vrot.slane %v414_v0, 1  ;;  %v427_v3 = vadd.f32 %v426_v1, %v425_v63 }
 0x149   :  { %v416_v4 = vadd.f32 %v415_v2, %v414_v0  ;;  %v428_v7 = vrot.slane %v427_v3, 1 }
 0x14b   :  { %430 = vrot.lane.b32.xlu0 %v416_v4, %s1324_s1  ;;  %v429_v12 = vadd.f32 %v428_v7, %v427_v3 }
 0x14f   :  { %433 = vrot.lane.b32.xlu0 %v429_v12, %s1324_s1 }
 0x1bd   :  { %v431_v13 = vpop.permute.xlu0 %430 }
 0x1be   :  { %v432_v14 = vadd.f32 %v431_v13, %v416_v4 }
 0x1c0   :  { %436 = vrot.lane.b32.xlu1 %v432_v14, %s1325_s0 }
 0x1c1   :  { %v434_v15 = vpop.permute.xlu0 %433 }
 0x1c2   :  { %v435_v16 = vadd.f32 %v434_v15, %v429_v12  ;;  %v1306_v15 = vld [vmem:[%s1644_s2 + $0x18] sm:$0xff]  }
 0x1c4   :  { %439 = vrot.lane.b32.xlu1 %v435_v16, %s1325_s0 }
 0x232   :  { %v437_v17 = vpop.permute.xlu1 %436 }
 0x233   :  { %v438_v18 = vadd.f32 %v437_v17, %v432_v14  ;;  %v1308_v17 = vld [vmem:[%s1644_s2 + $0x28] sm:$0xff]  }
 0x235   :  { %442 = vrot.lane.b32.xlu0 %v438_v18, %s1326_s10 }
 0x236   :  { %v440_v19 = vpop.permute.xlu1 %439 }
 0x237   :  { %v441_v20 = vadd.f32 %v440_v19, %v435_v16  ;;  %v1307_v16 = vld [vmem:[%s1644_s2 + $0x20] sm:$0xff]   ;;  %v1310_v19 = vld [vmem:[%s1644_s2 + $0x38] sm:$0xff]  }
 0x239   :  { %445 = vrot.lane.b32.xlu1 %v441_v20, %s1326_s10 }
 0x2a7   :  { %v443_v23 = vpop.permute.xlu0 %442 }
 0x2a8   :  { %v444_v24 = vadd.f32 %v443_v23, %v438_v18  ;;  %v1309_v18 = vld [vmem:[%s1644_s2 + $0x30] sm:$0xff]  }
 0x2aa   :  { %448 = vrot.lane.b32.xlu0 %v444_v24, %s1327_s17 }
 0x2ab   :  { %v446_v26 = vpop.permute.xlu1 %445 }
 0x2ac   :  { %v447_v27 = vadd.f32 %v446_v26, %v441_v20  ;;  %v1311_v20 = vld [vmem:[%s1644_s2 + $0x80] sm:$0xff]   ;;  %v1312_v26 = vld [vmem:[%s1644_s2 + $0x88] sm:$0xff]  }
 0x2ae   :  { %451 = vrot.lane.b32.xlu1 %v447_v27, %s1327_s17 }
 0x31c   :  { %v449_v34 = vpop.permute.xlu0 %448 }
 0x31d   :  { %v450_v35 = vadd.f32 %v449_v34, %v444_v24 }
 0x31f   :  { %v454_v36 = vmul.f32 0.001953125, %v450_v35 }
 0x320   :  { %v452_v37 = vpop.permute.xlu1 %451 }
 0x321   :  { %v453_v38 = vadd.f32 %v452_v37, %v447_v27  ;;  %v456_v39 = vmul.f32 %v454_v36, %v454_v36 }
 0x323   :  { %v455_v40 = vmul.f32 0.001953125, %v453_v38 }
 0x325   :  { %v457_v41 = vsub.f32 %v455_v40, %v456_v39 }
 0x327   :  { %v458_v42 = vadd.f32 1e-05, %v457_v41 }
 0x329   :  { %1319 = vrsqrt.f32 %v458_v42 }
 0x333   :  { %v1320_v51 = vpop.eup %1319 }
 0x334   :  { %v460_v52 = vmul.f32 %v1320_v51, %v406_v49 }
 0x336   :  { %v465_v54 = vrot.slane %v460_v52, %v1526_v50  ;;  %v471_v55 = vmul.f32 %v460_v52, %v454_v36 }
 0x338   :  { %v472_v56 = vsub.f32 %v407_v53, %v471_v55  ;;  %v467_v57 = vmul.f32 %v465_v54, %v1470_v46  ;;  %v468_v58 = vmul.f32 %v465_v54, %v1474_v48  ;;  %v469_v59 = vmul.f32 %v1468_v45, %v465_v54  ;;  %v1304_v45 = vld [vmem:[%s1644_s2 + $0x8] sm:$0xff]  }
 0x339   :  { %v470_v60 = vmul.f32 %v1472_v47, %v465_v54  ;;  %v1305_v47 = vld [vmem:[%s1644_s2 + $0x10] sm:$0xff]  }
 0x33a   :  { %v477_v61 = vrot.slane %v472_v56, %v1526_v50 }
 0x33c   :  { %v479_v62 = vadd.f32 %v477_v61, %v467_v57  ;;  %v480_v63 = vadd.f32 %v477_v61, %v468_v58  ;;  %v481_v0 = vadd.f32 %v477_v61, %v469_v59  ;;  %v482_v1 = vadd.f32 %v477_v61, %v470_v60 }
 0x33e   :  { %v483_v2 = vmax.f32 %v479_v62, 0.0  ;;  %v484_v3 = vmax.f32 %v480_v63, 0.0  ;;  %v485_v4 = vmax.f32 %v481_v0, 0.0  ;;  %v486_v7 = vmax.f32 %v482_v1, 0.0 }
 0x340   :  { %487 = vst [vmem:[#allocation2 + $0x1] sm:$0xff] %v483_v2  ;;  %488 = vst [vmem:[#allocation2 + $0x9] sm:$0xff] %v484_v3  ;;  %v517_v46 = vpack.c.bf16 %v484_v3, %v483_v2  ;;  %v518_v48 = vpack.c.bf16 %v486_v7, %v485_v4 }
 0x341   :  { %489 = vst [vmem:[#allocation2 + $0x19] sm:$0xff] %v485_v4  ;;  %490 = vst [vmem:[#allocation2 + $0x21] sm:$0xff] %v486_v7 }
 0x342   :  { %1204 = vmatprep.mubr.bf16.mxu1 %v517_v46 }
 0x343   :  { %1205 = vmatmul.mubr.bf16.vlgmr.msra.gmra.mrb[0].mxu1 %v518_v48 }
 0x344   :  { %1209 = vmatpush3.bf16.msra.mxu1 %v1303_v33  ;;  %v1318_v33 = vld [vmem:[%s1644_s2 + $0xb8] sm:$0xff]  }
 0x345   :  { %1210 = vmatprep.subr.bf16.mxu1 %v1304_v45 }
 0x347   :  { %v491_v12 = vld [vmem:[#allocation2] sm:$0xff]  ;;  %v492_v13 = vld [vmem:[#allocation2 + $0x8] sm:$0xff] }
 0x348   :  { %v495_v14 = vpack.c.bf16 %v492_v13, %v491_v12  ;;  %1211 = vmatpush3.bf16.msra.mxu1 %v1304_v45  ;;  %v493_v21 = vld [vmem:[#allocation2 + $0x18] sm:$0xff]  ;;  %v494_v22 = vld [vmem:[#allocation2 + $0x20] sm:$0xff]  ;;  %v731_v24 = vld [vmem:[#allocation2 + $0xa] sm:$0xff] }
 0x349   :  { %1212 = vmatprep.subr.bf16.mxu1 %v1305_v47  ;;  %v730_v23 = vld [vmem:[#allocation2 + $0x2] sm:$0xff]  ;;  %v496_v25 = vpack.c.bf16 %v494_v22, %v493_v21  ;;  %v732_v34 = vld [vmem:[#allocation2 + $0x1a] sm:$0xff] }
 0x34a   :  { %1224 = vmatprep.mubr.bf16.mxu1 %v495_v14  ;;  %v734_v27 = vpack.c.bf16 %v731_v24, %v730_v23  ;;  %v733_v35 = vld [vmem:[#allocation2 + $0x22] sm:$0xff] }
 0x34b   :  { %v735_v36 = vpack.c.bf16 %v733_v35, %v732_v34 }
 0x34c   :  { %1213 = vmatpush3.bf16.msra.mxu1 %v1305_v47 }
 0x34d   :  { %1214 = vmatprep.subr.bf16.mxu1 %v1306_v15 }
 0x350   :  { %1215 = vmatpush3.bf16.msra.mxu1 %v1306_v15 }
 0x351   :  { %1216 = vmatprep.subr.bf16.mxu1 %v1307_v16 }
 0x354   :  { %1217 = vmatpush3.bf16.msra.mxu1 %v1307_v16 }
 0x355   :  { %1218 = vmatprep.subr.bf16.mxu1 %v1308_v17 }
 0x358   :  { %1219 = vmatpush3.bf16.msra.mxu1 %v1308_v17 }
 0x359   :  { %1220 = vmatprep.subr.bf16.mxu1 %v1309_v18 }
 0x35c   :  { %1221 = vmatpush3.bf16.msra.mxu1 %v1309_v18 }
 0x35d   :  { %1222 = vmatprep.subr.bf16.mxu1 %v1310_v19 }
 0x360   :  { %1223 = vmatpush3.bf16.msra.mxu1 %v1310_v19 }
 0x361   :  { %1228 = vmatprep.subr.bf16.mxu1 %v1311_v20 }
 0x363   :  { %1225 = vmatmul.mubr.bf16.vlgmr.msra.gmra.mrb[0].mxu1 %v496_v25 }
 0x364   :  { %1229 = vmatpush3.bf16.msra.mxu1 %v1311_v20  ;;  %1244 = vmatprep.mubr.bf16.mxu1 %v734_v27  ;;  %v854_v27 = vld [vmem:[%s1647_s5] sm:$0x1] }
 0x365   :  { %1230 = vmatprep.subr.bf16.mxu1 %v1312_v26 }
 0x368   :  { %1231 = vmatpush3.bf16.msra.mxu1 %v1312_v26 }
 0x369   :  { %1232 = vmatprep.subr.bf16.mxu1 %v1313_v28 }
 0x36c   :  { %1233 = vmatpush3.bf16.msra.mxu1 %v1313_v28 }
 0x36d   :  { %1234 = vmatprep.subr.bf16.mxu1 %v1314_v29 }
 0x370   :  { %1235 = vmatpush3.bf16.msra.mxu1 %v1314_v29 }
 0x371   :  { %1236 = vmatprep.subr.bf16.mxu1 %v1315_v30 }
 0x374   :  { %1237 = vmatpush3.bf16.msra.mxu1 %v1315_v30  ;;  %v855_v30 = vld [vmem:[%s1648_s6] sm:$0x1] }
 0x375   :  { %1238 = vmatprep.subr.bf16.mxu1 %v1316_v31 }
 0x378   :  { %1239 = vmatpush3.bf16.msra.mxu1 %v1316_v31 }
 0x379   :  { %1240 = vmatprep.subr.bf16.mxu1 %v1317_v32 }
 0x37c   :  { %1241 = vmatpush3.bf16.msra.mxu1 %v1317_v32 }
 0x37d   :  { %1242 = vmatprep.subr.bf16.mxu1 %v1318_v33 }
 0x380   :  { %1243 = vmatpush3.bf16.msra.mxu1 %v1318_v33 }
 0x383   :  { %1245 = vmatmul.mubr.bf16.vlgmr.msra.gmra.mrb[0].mxu1 %v735_v36 }
 0x456   :  { %v1582_v37 = vpop.f32.mrb[0].mxu1 }
 0x457   :  { %v1584_v38 = vpop.f32.mrb[1].mxu1  ;;  %v867_v44 = vmul.f32 %v1582_v37, %v1582_v37 }
 0x458   :  { %v1586_v39 = vpop.f32.mrb[2].mxu1  ;;  %v865_v41 = vmul.f32 %v1584_v38, %v1584_v38 }
 0x459   :  { %v1588_v40 = vpop.f32.mrb[3].mxu1  ;;  %v868_v52 = vmul.f32 %v1586_v39, %v1586_v39 }
 0x45a   :  { %v856_v42 = vadd.f32 %v1588_v40, %v1584_v38  ;;  %v866_v43 = vmul.f32 %v1588_v40, %v1588_v40 }
 0x45c   :  { %v857_v49 = vadd.f32 %v1582_v37, %v856_v42  ;;  %v869_v51 = vadd.f32 %v866_v43, %v865_v41 }
 0x45e   :  { %v858_v53 = vadd.f32 %v1586_v39, %v857_v49  ;;  %v870_v54 = vadd.f32 %v869_v51, %v867_v44 }
 0x460   :  { %v859_v55 = vrot.slane %v858_v53, 4  ;;  %v871_v56 = vadd.f32 %v870_v54, %v868_v52 }
 0x462   :  { %v860_v57 = vadd.f32 %v859_v55, %v858_v53  ;;  %v872_v58 = vrot.slane %v871_v56, 4 }
 0x464   :  { %v861_v59 = vrot.slane %v860_v57, 2  ;;  %v873_v60 = vadd.f32 %v872_v58, %v871_v56 }
 0x466   :  { %v862_v61 = vadd.f32 %v861_v59, %v860_v57  ;;  %v874_v62 = vrot.slane %v873_v60, 2 }
 0x468   :  { %v863_v63 = vrot.slane %v862_v61, 1  ;;  %v875_v0 = vadd.f32 %v874_v62, %v873_v60 }
 0x46a   :  { %v864_v1 = vadd.f32 %v863_v63, %v862_v61  ;;  %v876_v2 = vrot.slane %v875_v0, 1 }
 0x46c   :  { %878 = vrot.lane.b32.xlu0 %v864_v1, %s1324_s1  ;;  %v877_v3 = vadd.f32 %v876_v2, %v875_v0 }
 0x46e   :  { %881 = vrot.lane.b32.xlu1 %v877_v3, %s1324_s1 }
 0x4de   :  { %v879_v4 = vpop.permute.xlu0 %878 }
 0x4df   :  { %v880_v7 = vadd.f32 %v879_v4, %v864_v1 }
 0x4e0   :  { %v882_v46 = vpop.permute.xlu1 %881 }
 0x4e1   :  { %v883_v48 = vadd.f32 %v882_v46, %v877_v3  ;;  %884 = vrot.lane.b32.xlu0 %v880_v7, %s1325_s0 }
 0x4e3   :  { %887 = vrot.lane.b32.xlu1 %v883_v48, %s1325_s0 }
 0x553   :  { %v885_v45 = vpop.permute.xlu0 %884 }
 0x554   :  { %v886_v47 = vadd.f32 %v885_v45, %v880_v7 }
 0x555   :  { %v888_v12 = vpop.permute.xlu1 %887 }
 0x556   :  { %v889_v13 = vadd.f32 %v888_v12, %v883_v48  ;;  %890 = vrot.lane.b32.xlu0 %v886_v47, %s1326_s10 }
 0x558   :  { %893 = vrot.lane.b32.xlu1 %v889_v13, %s1326_s10 }
 0x5c8   :  { %v891_v14 = vpop.permute.xlu0 %890 }
 0x5c9   :  { %v892_v15 = vadd.f32 %v891_v14, %v886_v47 }
 0x5ca   :  { %v894_v16 = vpop.permute.xlu1 %893 }
 0x5cb   :  { %v895_v17 = vadd.f32 %v894_v16, %v889_v13  ;;  %896 = vrot.lane.b32.xlu0 %v892_v15, %s1327_s17 }
 0x5cd   :  { %899 = vrot.lane.b32.xlu1 %v895_v17, %s1327_s17 }
 0x63d   :  { %v897_v18 = vpop.permute.xlu0 %896 }
 0x63e   :  { %v898_v19 = vadd.f32 %v897_v18, %v892_v15 }
 0x63f   :  { %v900_v20 = vpop.permute.xlu1 %899 }
 0x640   :  { %v902_v21 = vmul.f32 0.001953125, %v898_v19  ;;  %v901_v22 = vadd.f32 %v900_v20, %v895_v17 }
 0x642   :  { %v904_v23 = vmul.f32 %v902_v21, %v902_v21  ;;  %v903_v24 = vmul.f32 0.001953125, %v901_v22 }
 0x644   :  { %v905_v25 = vsub.f32 %v903_v24, %v904_v23 }
 0x646   :  { %v906_v26 = vadd.f32 1e-05, %v905_v25 }
 0x648   :  { %1321 = vrsqrt.f32 %v906_v26 }
 0x652   :  { %v1322_v28 = vpop.eup %1321 }
 0x653   :  { %v908_v29 = vmul.f32 %v1322_v28, %v854_v27 }
 0x655   :  { %v913_v31 = vrot.slane %v908_v29, %v1526_v50  ;;  %v919_v32 = vmul.f32 %v908_v29, %v902_v21 }
 0x657   :  { %v920_v33 = vsub.f32 %v855_v30, %v919_v32  ;;  %v915_v34 = vmul.f32 %v913_v31, %v1584_v38  ;;  %v916_v35 = vmul.f32 %v913_v31, %v1588_v40  ;;  %v917_v36 = vmul.f32 %v1582_v37, %v913_v31 }
 0x658   :  { %v918_v41 = vmul.f32 %v1586_v39, %v913_v31 }
 0x659   :  { %v925_v42 = vrot.slane %v920_v33, %v1526_v50 }
 0x65b   :  { %v927_v43 = vadd.f32 %v925_v42, %v915_v34  ;;  %v928_v44 = vadd.f32 %v925_v42, %v916_v35  ;;  %v929_v49 = vadd.f32 %v925_v42, %v917_v36  ;;  %v930_v51 = vadd.f32 %v925_v42, %v918_v41 }
 0x65d   :  { %v931_v52 = vadd.f32 %v1061_v8, %v927_v43  ;;  %v932_v53 = vadd.f32 %v1062_v9, %v928_v44  ;;  %v933_v38 = vadd.f32 %v1065_v10, %v929_v49  ;;  %v934_v37 = vadd.f32 %v1066_v11, %v930_v51 }
 0x65f   :  { %v935_v40 = vmax.f32 %v931_v52, 0.0  ;;  %v936_v39 = vmax.f32 %v932_v53, 0.0  ;;  %v937_v54 = vmax.f32 %v933_v38, 0.0  ;;  %v938_v50 = vmax.f32 %v934_v37, 0.0 }
 0x661   :  { %939 = vst [vmem:[%s1649_s7] sm:$0xff] %v935_v40  ;;  %940 = vst [vmem:[%s1649_s7 + $0x8] sm:$0xff] %v936_v39 }
 0x662   :  { %941 = vst [vmem:[%s1649_s7 + $0x10] sm:$0xff] %v937_v54  ;;  %942 = vst [vmem:[%s1649_s7 + $0x18] sm:$0xff] %v938_v50 }

</bundles_post_ra>
